<compile_context>
chip_gen: v7x
topology: tpu7x:2x2x1
jax: 0.10.0
libtpu: 0.0.40
codegen_flags: <defaults>
</compile_context>

<pallas_src>
import jax
import jax.numpy as jnp
from jax.experimental import pallas as pl
from jax.experimental.pallas import tpu as pltpu

H1, H2 = 200, 100          # true hidden sizes (PyTorch module)
H1_PAD, H2_PAD = 256, 128  # lane-aligned padded hidden sizes used in-kernel
LANE = 128                 # lane width for the lane-dense output padding


def _round_up(n, m):
    return ((n + m - 1) // m) * m


def value_kernel(x_ref, w1_ref, b1_ref, w2_ref, b2_ref, w3_ref, b3_ref, o_ref):
    # bf16 MXU matmuls with f32 accumulation; bias + ReLU in f32 on the VPU.
    x = x_ref[...].astype(jnp.bfloat16)
    h = jnp.dot(x, w1_ref[...], preferred_element_type=jnp.float32) + b1_ref[...]
    h = jnp.maximum(h, 0.0)
    h = jnp.dot(h.astype(jnp.bfloat16), w2_ref[...],
                preferred_element_type=jnp.float32) + b2_ref[...]
    h = jnp.maximum(h, 0.0)
    out = jnp.dot(h.astype(jnp.bfloat16), w3_ref[...],
                  preferred_element_type=jnp.float32) + b3_ref[...]
    o_ref[...] = out.astype(o_ref.dtype)


def value_forward(x, params, action_dim, *, block_batch=2048):
    """x: (batch, state_dim), f32 or bf16. params: padded weights from init_params."""
    w1, b1, w2, b2, w3, b3 = params
    batch, state_dim = x.shape
    h1p, h2p, a_pad = w1.shape[1], w2.shape[1], w3.shape[1]

    # Batch tile: sublane-aligned and large (amortizes per-step overhead).
    # For big batches keep >=2 balanced grid steps so v7x's 2 TCs both get work.
    tb = min(block_batch, _round_up(batch, 8))
    if batch > 1024:
        tb = min(tb, _round_up(pl.cdiv(batch, 2), 8))
    grid = (pl.cdiv(batch, tb),)  # ragged last block handled by Pallas (no jnp.pad)

    out = pl.pallas_call(
        value_kernel,
        out_shape=jax.ShapeDtypeStruct((batch, a_pad), jnp.float32),
        grid=grid,
        in_specs=[
            # activations: tiled over the batch axis
            pl.BlockSpec((tb, state_dim), lambda i: (i, 0)),
            # weights / biases: constant block index -> stay VMEM-resident
            pl.BlockSpec((state_dim, h1p), lambda i: (0, 0)),
            pl.BlockSpec((1, h1p), lambda i: (0, 0)),
            pl.BlockSpec((h1p, h2p), lambda i: (0, 0)),
            pl.BlockSpec((1, h2p), lambda i: (0, 0)),
            pl.BlockSpec((h2p, a_pad), lambda i: (0, 0)),
            pl.BlockSpec((1, a_pad), lambda i: (0, 0)),
        ],
        out_specs=pl.BlockSpec((tb, a_pad), lambda i: (i, 0)),
        compiler_params=pltpu.CompilerParams(
            dimension_semantics=("parallel",),
            vmem_limit_bytes=48 * 1024 * 1024),
    )(x, w1, b1, w2, b2, w3, b3)
    # Slice the lane-dense padded output back to the true action_dim.
    return out[:, :action_dim]


def init_params(key, state_dim, action_dim):
    """PyTorch-Linear-like uniform init; hidden dims zero-padded to 256/128 and
    action_dim zero-padded to a full 128-lane tile. Weight matrices in bf16,
    biases in f32. Zero padding is exact: padded h1/h2 columns are relu(0+0)=0
    and the matching padded weight rows are 0, so the true outputs are unchanged."""
    ks = jax.random.split(key, 6)
    a_pad = _round_up(action_dim, LANE)

    def lin(kw, kb, fan_in, fan_out):
        bound = float(fan_in) ** -0.5
        # stored as (in, out): pre-transposed vs. PyTorch's (out, in)
        w = jax.random.uniform(kw, (fan_in, fan_out), jnp.float32, -bound, bound)
        b = jax.random.uniform(kb, (1, fan_out), jnp.float32, -bound, bound)
        return w, b

    w1, b1 = lin(ks[0], ks[1], state_dim, H1)
    w2, b2 = lin(ks[2], ks[3], H1, H2)
    w3, b3 = lin(ks[4], ks[5], H2, action_dim)

    w1p = jnp.pad(w1, ((0, 0), (0, H1_PAD - H1))).astype(jnp.bfloat16)
    b1p = jnp.pad(b1, ((0, 0), (0, H1_PAD - H1)))
    w2p = jnp.pad(w2, ((0, H1_PAD - H1), (0, H2_PAD - H2))).astype(jnp.bfloat16)
    b2p = jnp.pad(b2, ((0, 0), (0, H2_PAD - H2)))
    w3p = jnp.pad(w3, ((0, H2_PAD - H2), (0, a_pad - action_dim))).astype(jnp.bfloat16)
    b3p = jnp.pad(b3, ((0, 0), (0, a_pad - action_dim)))   # fixed: was undefined
    return (w1p, b1p, w2p, b2p, w3p, b3p)


def value_reference(x, params, action_dim):
    """Plain-JAX reference with the same bf16-matmul / f32-accumulate math."""
    w1, b1, w2, b2, w3, b3 = params
    h = jnp.dot(x.astype(jnp.bfloat16), w1,
                preferred_element_type=jnp.float32) + b1
    h = jnp.maximum(h, 0.0)
    h = jnp.dot(h.astype(jnp.bfloat16), w2,
                preferred_element_type=jnp.float32) + b2
    h = jnp.maximum(h, 0.0)
    out = jnp.dot(h.astype(jnp.bfloat16), w3,
                  preferred_element_type=jnp.float32) + b3
    return out[:, :action_dim]


if __name__ == "__main__":
    key = jax.random.PRNGKey(0)
    k_param, k_x = jax.random.split(key)

    batch, state_dim, action_dim = 8, 16, 4
    params = init_params(k_param, state_dim, action_dim)
    x = jax.random.normal(k_x, (batch, state_dim), jnp.float32)

    out = value_forward(x, params, action_dim)
    out = jax.block_until_ready(out)

    ref = value_reference(x, params, action_dim)
    assert out.shape == (batch, action_dim)
    assert jnp.allclose(out, ref, atol=1e-3, rtol=1e-3)

    print("KERNEL_OK")
</pallas_src>

<mosaic_0001>
module attributes {stable_mosaic.version = 11 : i64} {
  func.func @value_kernel(%arg0: i32, %arg1: memref<8x16xf32, #tpu.memory_space<vmem>>, %arg2: memref<16x256xbf16, #tpu.memory_space<vmem>>, %arg3: memref<1x256xf32, #tpu.memory_space<vmem>>, %arg4: memref<256x128xbf16, #tpu.memory_space<vmem>>, %arg5: memref<1x128xf32, #tpu.memory_space<vmem>>, %arg6: memref<128x128xbf16, #tpu.memory_space<vmem>>, %arg7: memref<1x128xf32, #tpu.memory_space<vmem>>, %arg8: memref<8x128xf32, #tpu.memory_space<vmem>>) attributes {dimension_semantics = [#tpu.dimension_semantics<parallel>], iteration_bounds = array<i64: 1>, scalar_prefetch = 0 : i64, scratch_operands = 0 : i64, tpu.core_type = #tpu.core_type<tc>, window_params = [{transform_indices = @transform_0, window_bounds = array<i64: 8, 16>}, {pipeline_mode = #tpu.pipeline_mode<synchronous>, transform_indices = @transform_1, window_bounds = array<i64: 16, 256>}, {pipeline_mode = #tpu.pipeline_mode<synchronous>, transform_indices = @transform_2, window_bounds = array<i64: 1, 256>}, {pipeline_mode = #tpu.pipeline_mode<synchronous>, transform_indices = @transform_3, window_bounds = array<i64: 256, 128>}, {pipeline_mode = #tpu.pipeline_mode<synchronous>, transform_indices = @transform_4, window_bounds = array<i64: 1, 128>}, {pipeline_mode = #tpu.pipeline_mode<synchronous>, transform_indices = @transform_5, window_bounds = array<i64: 128, 128>}, {pipeline_mode = #tpu.pipeline_mode<synchronous>, transform_indices = @transform_6, window_bounds = array<i64: 1, 128>}, {transform_indices = @transform_7, window_bounds = array<i64: 8, 128>}]} {
    %c0 = arith.constant 0 : index
    %c0_0 = arith.constant 0 : index
    %0 = vector.load %arg1[%c0, %c0_0] : memref<8x16xf32, #tpu.memory_space<vmem>>, vector<8x16xf32>
    %1 = arith.truncf %0 : vector<8x16xf32> to vector<8x16xbf16>
    %c0_1 = arith.constant 0 : index
    %c0_2 = arith.constant 0 : index
    %2 = vector.load %arg2[%c0_1, %c0_2] : memref<16x256xbf16, #tpu.memory_space<vmem>>, vector<16x256xbf16>
    %cst = arith.constant dense<0.000000e+00> : vector<8x256xf32>
    %3 = tpu.matmul %1, %2, %cst {dimension_numbers = #tpu.dot_dimension_numbers<[1], [0], [0], [1], [0, 0, 1, 1], [], []>} : vector<8x16xbf16>, vector<16x256xbf16>, vector<8x256xf32> -> vector<8x256xf32>
    %c0_3 = arith.constant 0 : index
    %c0_4 = arith.constant 0 : index
    %4 = vector.load %arg3[%c0_3, %c0_4] : memref<1x256xf32, #tpu.memory_space<vmem>>, vector<1x256xf32>
    %5 = vector.broadcast %4 : vector<1x256xf32> to vector<8x256xf32>
    %6 = arith.addf %3, %5 : vector<8x256xf32>
    %cst_5 = arith.constant 0.000000e+00 : f32
    %7 = vector.broadcast %cst_5 : f32 to vector<8x256xf32>
    %8 = arith.maximumf %6, %7 : vector<8x256xf32>
    %9 = arith.truncf %8 : vector<8x256xf32> to vector<8x256xbf16>
    %c0_6 = arith.constant 0 : index
    %c0_7 = arith.constant 0 : index
    %10 = vector.load %arg4[%c0_6, %c0_7] : memref<256x128xbf16, #tpu.memory_space<vmem>>, vector<256x128xbf16>
    %cst_8 = arith.constant dense<0.000000e+00> : vector<8x128xf32>
    %11 = tpu.matmul %9, %10, %cst_8 {dimension_numbers = #tpu.dot_dimension_numbers<[1], [0], [0], [1], [0, 0, 1, 1], [], []>} : vector<8x256xbf16>, vector<256x128xbf16>, vector<8x128xf32> -> vector<8x128xf32>
    %c0_9 = arith.constant 0 : index
    %c0_10 = arith.constant 0 : index
    %12 = vector.load %arg5[%c0_9, %c0_10] : memref<1x128xf32, #tpu.memory_space<vmem>>, vector<1x128xf32>
    %13 = vector.broadcast %12 : vector<1x128xf32> to vector<8x128xf32>
    %14 = arith.addf %11, %13 : vector<8x128xf32>
    %cst_11 = arith.constant 0.000000e+00 : f32
    %15 = vector.broadcast %cst_11 : f32 to vector<8x128xf32>
    %16 = arith.maximumf %14, %15 : vector<8x128xf32>
    %17 = arith.truncf %16 : vector<8x128xf32> to vector<8x128xbf16>
    %c0_12 = arith.constant 0 : index
    %c0_13 = arith.constant 0 : index
    %18 = vector.load %arg6[%c0_12, %c0_13] : memref<128x128xbf16, #tpu.memory_space<vmem>>, vector<128x128xbf16>
    %cst_14 = arith.constant dense<0.000000e+00> : vector<8x128xf32>
    %19 = tpu.matmul %17, %18, %cst_14 {dimension_numbers = #tpu.dot_dimension_numbers<[1], [0], [0], [1], [0, 0, 1, 1], [], []>} : vector<8x128xbf16>, vector<128x128xbf16>, vector<8x128xf32> -> vector<8x128xf32>
    %c0_15 = arith.constant 0 : index
    %c0_16 = arith.constant 0 : index
    %20 = vector.load %arg7[%c0_15, %c0_16] : memref<1x128xf32, #tpu.memory_space<vmem>>, vector<1x128xf32>
    %21 = vector.broadcast %20 : vector<1x128xf32> to vector<8x128xf32>
    %22 = arith.addf %19, %21 : vector<8x128xf32>
    %c0_17 = arith.constant 0 : index
    %c0_18 = arith.constant 0 : index
    %23 = vector.load %arg8[%c0_17, %c0_18] : memref<8x128xf32, #tpu.memory_space<vmem>>, vector<8x128xf32>
    tpu.vector_store %arg8[%c0_17, %c0_18], %22 {strides = array<i32>} : memref<8x128xf32, #tpu.memory_space<vmem>>, vector<8x128xf32>,
    return
  }
  func.func @transform_0(%arg0: i32) -> (i32, i32) {
    %c0_i32 = arith.constant 0 : i32
    %c0_i32_0 = arith.constant 0 : i32
    return %arg0, %c0_i32 : i32, i32
  }
  func.func @transform_1(%arg0: i32) -> (i32, i32) {
    %c0_i32 = arith.constant 0 : i32
    %c0_i32_0 = arith.constant 0 : i32
    %c0_i32_1 = arith.constant 0 : i32
    return %c0_i32, %c0_i32_0 : i32, i32
  }
  func.func @transform_2(%arg0: i32) -> (i32, i32) {
    %c0_i32 = arith.constant 0 : i32
    %c0_i32_0 = arith.constant 0 : i32
    %c0_i32_1 = arith.constant 0 : i32
    return %c0_i32, %c0_i32_0 : i32, i32
  }
  func.func @transform_3(%arg0: i32) -> (i32, i32) {
    %c0_i32 = arith.constant 0 : i32
    %c0_i32_0 = arith.constant 0 : i32
    %c0_i32_1 = arith.constant 0 : i32
    return %c0_i32, %c0_i32_0 : i32, i32
  }
  func.func @transform_4(%arg0: i32) -> (i32, i32) {
    %c0_i32 = arith.constant 0 : i32
    %c0_i32_0 = arith.constant 0 : i32
    %c0_i32_1 = arith.constant 0 : i32
    return %c0_i32, %c0_i32_0 : i32, i32
  }
  func.func @transform_5(%arg0: i32) -> (i32, i32) {
    %c0_i32 = arith.constant 0 : i32
    %c0_i32_0 = arith.constant 0 : i32
    %c0_i32_1 = arith.constant 0 : i32
    return %c0_i32, %c0_i32_0 : i32, i32
  }
  func.func @transform_6(%arg0: i32) -> (i32, i32) {
    %c0_i32 = arith.constant 0 : i32
    %c0_i32_0 = arith.constant 0 : i32
    %c0_i32_1 = arith.constant 0 : i32
    return %c0_i32, %c0_i32_0 : i32, i32
  }
  func.func @transform_7(%arg0: i32) -> (i32, i32) {
    %c0_i32 = arith.constant 0 : i32
    %c0_i32_0 = arith.constant 0 : i32
    return %arg0, %c0_i32 : i32, i32
  }
}

</mosaic_0001>

<bundles_post_ra>
// kernel: tpu_custom_call.1
= control target key start
LH: loop header
LB: loop body
LE: loop exit
PB: predicated region body
PF: predicated region fallthrough
CT: control target
= control target key end

     0   :  { %12 = vsyncpa [#allocation3], 0  ;;  %s820_s0 = inlined_call_operand.hbm [shape: f32[8,16], index: 0, kind: input, shape index: {}]   ;;  %s821_s1 = inlined_call_operand.hbm [shape: bf16[16,256], index: 1, kind: input, shape index: {}]   ;;  %s822_s2 = inlined_call_operand.vmem [shape: f32[1,256], index: 2, kind: input, shape index: {}]   ;;  %s823_s3 = inlined_call_operand.hbm [shape: bf16[256,128], index: 3, kind: input, shape index: {}]   ;;  %s824_s4 = inlined_call_operand.vmem [shape: f32[1,128], index: 4, kind: input, shape index: {}]   ;;  %s825_s5 = inlined_call_operand.hbm [shape: bf16[128,128], index: 5, kind: input, shape index: {}]   ;;  %s826_s6 = inlined_call_operand.vmem [shape: f32[1,128], index: 6, kind: input, shape index: {}]   ;;  %s827_s7 = inlined_call_operand.hbm [shape: f32[8,128], index: 7, kind: output, shape index: {}]  }
   0x1   :  { %13 = vsyncpa [#allocation6], 0 }
   0x2   :  { %14 = vsyncpa [#allocation9], 0 }
   0x3   :  { %15 = vsyncpa [#allocation4], 0  ;;  %s699_s24 = smov [#allocation5]   ;;  %s581_s28 = scalar_lea.hbm %s821_s1, 256 }
   0x4   :  { %s31_s25 = sshll.u32 %s699_s24, 4  ;;  %p582_p0 = scmp.ne.s32.totalorder %s821_s1, %s581_s28  ;;  %s32_s25 = int_to_ptr.vmem [resolvable:$true] %s31_s25 }
   0x5   :  { %p585_p1 = scmp.lt.u32.totalorder %s581_s28, %s821_s1 }
   0x7   :  { %p587_p2 = pnand %p585_p1, %p582_p0 }
   0x9   :  { %590 = shalt.err (!%p587_p2)
}
   0xa   :  { %s591_s10 = scalar_lea.vmem %s32_s25, 256  ;;  %p596_p4 = scmp.lt.s32.totalorder %s32_s25, %s32_s25 }
   0xb   :  { %p592_p3 = scmp.ne.s32.totalorder %s32_s25, %s591_s10  ;;  %p597_p5 = scmp.lt.s32.totalorder %s591_s10, %s591_s10 }
   0xd   :  { %p598_p6 = por %p597_p5, %p596_p4 }
   0xf   :  { %p599_p7 = pnand %p598_p6, %p592_p3 }
  0x11   :  { %602 = shalt.err (!%p599_p7)
}
  0x12   :  { %s700_s11 = smov 128   ;;  %s701_s12 = smov 8  }
  0x13   :  { %37 = dma.hbm_to_vmem [thread:$0]  %s821_s1, 256, %s32_s25, [#allocation6], %s700_s11, %s700_s11, %s701_s12  }
  0x14   :  { %s702_s15 = smov [#allocation2]   ;;  %s703_s17 = smov [#allocation7]  }
  0x15   :  { %s22_s16 = sshll.u32 %s702_s15, 4  ;;  %s45_s18 = sshll.u32 %s703_s17, 4  ;;  %s23_s16 = int_to_ptr.vmem [resolvable:$true] %s22_s16  ;;  %s46_s18 = int_to_ptr.vmem [resolvable:$true] %s45_s18 }
  0x16   :  { %s603_s21 = scalar_lea.hbm %s820_s0, 128 }
  0x17   :  { %p604_p8 = scmp.ne.s32.totalorder %s820_s0, %s603_s21  ;;  %p607_p9 = scmp.lt.u32.totalorder %s603_s21, %s820_s0 }
  0x19   :  { %p609_p10 = pnand %p607_p9, %p604_p8 }
  0x1b   :  { %612 = shalt.err (!%p609_p10)
}
  0x1c   :  { %s613_s1 = scalar_lea.vmem %s23_s16, 128  ;;  %p618_p12 = scmp.lt.s32.totalorder %s23_s16, %s23_s16 }
  0x1d   :  { %p614_p11 = scmp.ne.s32.totalorder %s23_s16, %s613_s1  ;;  %p619_p13 = scmp.lt.s32.totalorder %s613_s1, %s613_s1 }
  0x1f   :  { %p620_p0 = por %p619_p13, %p618_p12 }
  0x21   :  { %p621_p1 = pnand %p620_p0, %p614_p11 }
  0x23   :  { %624 = shalt.err (!%p621_p1)
}
  0x24   :  { %25 = dma.hbm_to_vmem [thread:$0]  %s820_s0, 128, %s23_s16, [#allocation3]  }
  0x25   :  { %s625_s30 = scalar_lea.hbm %s823_s3, 2048 }
  0x26   :  { %p626_p2 = scmp.ne.s32.totalorder %s823_s3, %s625_s30  ;;  %p629_p3 = scmp.lt.u32.totalorder %s625_s30, %s823_s3 }
  0x28   :  { %p631_p4 = pnand %p629_p3, %p626_p2 }
  0x2a   :  { %634 = shalt.err (!%p631_p4)
}
  0x2b   :  { %s635_s12 = scalar_lea.vmem %s46_s18, 2048  ;;  %p640_p6 = scmp.lt.s32.totalorder %s46_s18, %s46_s18 }
  0x2c   :  { %p636_p5 = scmp.ne.s32.totalorder %s46_s18, %s635_s12  ;;  %p641_p7 = scmp.lt.s32.totalorder %s635_s12, %s635_s12 }
  0x2e   :  { %p642_p8 = por %p641_p7, %p640_p6 }
  0x30   :  { %p643_p9 = pnand %p642_p8, %p636_p5 }
  0x32   :  { %646 = shalt.err (!%p643_p9)
}
  0x33   :  { %s704_s0 = smov 64   ;;  %s705_s13 = smov 4  }
  0x34   :  { %51 = dma.hbm_to_vmem [thread:$0]  %s823_s3, 2048, %s46_s18, [#allocation6], %s704_s0, %s704_s0, %s705_s13  }
  0x35   :  { %s706_s16 = smov [#allocation8]   ;;  %s647_s21 = scalar_lea.hbm %s825_s5, 1024 }
  0x36   :  { %s59_s17 = sshll.u32 %s706_s16, 4  ;;  %p648_p10 = scmp.ne.s32.totalorder %s825_s5, %s647_s21  ;;  %s60_s17 = int_to_ptr.vmem [resolvable:$true] %s59_s17 }
  0x37   :  { %p651_p11 = scmp.lt.u32.totalorder %s647_s21, %s825_s5 }
  0x39   :  { %p653_p12 = pnand %p651_p11, %p648_p10 }
  0x3b   :  { %656 = shalt.err (!%p653_p12)
}
  0x3c   :  { %s657_s1 = scalar_lea.vmem %s60_s17, 1024  ;;  %p662_p0 = scmp.lt.s32.totalorder %s60_s17, %s60_s17 }
  0x3d   :  { %p658_p13 = scmp.ne.s32.totalorder %s60_s17, %s657_s1  ;;  %p663_p1 = scmp.lt.s32.totalorder %s657_s1, %s657_s1 }
  0x3f   :  { %p664_p2 = por %p663_p1, %p662_p0 }
  0x41   :  { %p665_p3 = pnand %p664_p2, %p658_p13 }
  0x43   :  { %668 = shalt.err (!%p665_p3)
}
  0x44   :  { %65 = dma.hbm_to_vmem [thread:$0]  %s825_s5, 1024, %s60_s17, [#allocation9], %s704_s0, %s704_s0, %s705_s13  }
  0x45   :  { %691 = dma.done.wait [#allocation3], 128  }
  0x46   :  { %692 = vsyncadd [#allocation3], 4294967168 }
  0x47   :  { %693 = dma.done.wait [#allocation6], 2304  }
  0x48   :  { %694 = vsyncadd [#allocation6], 4294964992 }
  0x49   :  { %695 = dma.done.wait [#allocation9], 1024  }
  0x4a   :  { %696 = vsyncadd [#allocation9], 4294966272  ;;  %v707_v0 = vmov 0   ;;  %v554_v1 = vld [vmem:[#allocation5 + $0x4] ss:$8 sps:$4 sm:$0xff]   ;;  %v81_v3 = vld [vmem:[#allocation2] sm:$0xff]  ;;  %v87_v28 = vlaneseq }
  0x4b   :  { %143 = vmatprep.mubr.bf16.mxu0 %v707_v0  ;;  %v556_v2 = vld [vmem:[#allocation5] ss:$8 sps:$4 sm:$0xff]   ;;  %111 = vmatprep.subr.bf16.mxu0 %v554_v1  ;;  %v82_v4 = vpack.c.bf16 %v81_v3, %v81_v3  ;;  %v557_v5 = vld [vmem:[#allocation7 + $0x40] sm:$0xff]   ;;  %vm107_vm0 = vcmask 130048   ;;  %v559_v7 = vld [vmem:[#allocation7 + $0x48] sm:$0xff]   ;;  %v708_v22 = vmov 0.0  }
  0x4c   :  { %112 = vmatpush1.bf16.msra.mxu0 %v556_v2  ;;  %v558_v6 = vld [vmem:[#allocation7] sm:$0xff]   ;;  %491 = vmatprep.subr.bf16.mxu1 %v557_v5  ;;  %v560_v8 = vld [vmem:[#allocation7 + $0x8] sm:$0xff]   ;;  %v561_v9 = vld [vmem:[#allocation7 + $0x50] sm:$0xff]   ;;  %v88_v29 = vshrl.u32 %v87_v28, 7  ;;  %vm709_vm1 = vmmov 0   ;;  %s710_s30 = smov [#allocation10]  }
  0x4d   :  { %492 = vmatpush3.bf16.msra.mxu1 %v558_v6  ;;  %v562_v10 = vld [vmem:[#allocation7 + $0x10] sm:$0xff]   ;;  %v563_v11 = vld [vmem:[#allocation7 + $0x58] sm:$0xff]   ;;  %v565_v13 = vld [vmem:[#allocation7 + $0x60] sm:$0xff]   ;;  %522 = vmatprep.subr.bf16.mxu0 %v708_v22  ;;  %s451_s8 = sshll.u32 %s710_s30, 4  ;;  %s452_s8 = int_to_ptr.vmem [resolvable:$true] %s451_s8 }
  0x4e   :  { %493 = vmatprep.subr.bf16.mxu1 %v559_v7  ;;  %v564_v12 = vld [vmem:[#allocation7 + $0x18] sm:$0xff]   ;;  %v566_v14 = vld [vmem:[#allocation7 + $0x20] sm:$0xff]   ;;  %v567_v15 = vld [vmem:[#allocation7 + $0x68] sm:$0xff]   ;;  %v89_v30 = vsub.s32 0, %v88_v29  ;;  %v93_v32 = vsub.s32 1, %v88_v29  ;;  %p674_p5 = scmp.lt.s32.totalorder %s452_s8, %s452_s8 }
  0x4f   :  { %464 = vmatmul.mubr.msk.bf16.vlgmr.msra.gmra.mrb[0].mxu0 %vm107_vm0, %v82_v4  ;;  %v568_v16 = vld [vmem:[#allocation7 + $0x28] sm:$0xff]   ;;  %v569_v17 = vld [vmem:[#allocation7 + $0x70] sm:$0xff]   ;;  %v571_v19 = vld [vmem:[#allocation7 + $0x78] sm:$0xff]  }
  0x50   :  { %v570_v18 = vld [vmem:[#allocation7 + $0x30] sm:$0xff]   ;;  %v572_v20 = vld [vmem:[#allocation7 + $0x38] sm:$0xff]   ;;  %v573_v21 = vld [vmem:[#allocation8] sm:$0xff]   ;;  %538 = vmatprep.mubr.msk.bf16.mxu0 %vm709_vm1, %v708_v22 }
  0x51   :  { %494 = vmatpush3.bf16.msra.mxu1 %v560_v8  ;;  %523 = vmatpush3.bf16.msra.mxu0 %v573_v21  ;;  %v574_v23 = vld [vmem:[#allocation8 + $0x8] sm:$0xff]   ;;  %v575_v24 = vld [vmem:[#allocation8 + $0x10] sm:$0xff]   ;;  %v576_v25 = vld [vmem:[#allocation8 + $0x18] sm:$0xff]  }
  0x52   :  { %495 = vmatprep.subr.bf16.mxu1 %v561_v9  ;;  %524 = vmatprep.subr.bf16.mxu0 %v708_v22  ;;  %v577_v26 = vld [vmem:[#allocation8 + $0x20] sm:$0xff]   ;;  %v578_v27 = vld [vmem:[#allocation8 + $0x28] sm:$0xff]   ;;  %v579_v45 = vld [vmem:[#allocation8 + $0x30] sm:$0xff]  }
  0x53   :  { %v85_v31 = vld [vmem:[%s822_s2] sm:$0x3]  ;;  %v580_v46 = vld [vmem:[#allocation8 + $0x38] sm:$0xff]  }
  0x54   :  { %v90_v33 = vrot.slane %v85_v31, %v89_v30  ;;  %v94_v34 = vrot.slane %v85_v31, %v93_v32  ;;  %v465_v48 = vld [vmem:[%s824_s4] ss:$0 sm:$0xff]  ;;  %s669_s4 = scalar_lea.vmem %s452_s8, 128 }
  0x55   :  { %496 = vmatpush3.bf16.msra.mxu1 %v562_v10  ;;  %525 = vmatpush3.bf16.msra.mxu0 %v574_v23  ;;  %v482_v56 = vld [vmem:[%s826_s6] ss:$0 sm:$0xff]  ;;  %p670_p4 = scmp.ne.s32.totalorder %s452_s8, %s669_s4  ;;  %p675_p6 = scmp.lt.s32.totalorder %s669_s4, %s669_s4 }
  0x56   :  { %497 = vmatprep.subr.bf16.mxu1 %v563_v11  ;;  %526 = vmatprep.subr.bf16.mxu0 %v708_v22 }
  0x57   :  { %p676_p7 = por %p675_p6, %p674_p5 }
  0x59   :  { %498 = vmatpush3.bf16.msra.mxu1 %v564_v12  ;;  %527 = vmatpush3.bf16.msra.mxu0 %v575_v24  ;;  %p677_p8 = pnand %p676_p7, %p670_p4 }
  0x5a   :  { %499 = vmatprep.subr.bf16.mxu1 %v565_v13  ;;  %528 = vmatprep.subr.bf16.mxu0 %v708_v22 }
  0x5d   :  { %500 = vmatpush3.bf16.msra.mxu1 %v566_v14  ;;  %529 = vmatpush3.bf16.msra.mxu0 %v576_v25 }
  0x5e   :  { %501 = vmatprep.subr.bf16.mxu1 %v567_v15  ;;  %530 = vmatprep.subr.bf16.mxu0 %v708_v22 }
  0x61   :  { %502 = vmatpush3.bf16.msra.mxu1 %v568_v16  ;;  %531 = vmatpush3.bf16.msra.mxu0 %v577_v26 }
  0x62   :  { %503 = vmatprep.subr.bf16.mxu1 %v569_v17  ;;  %532 = vmatprep.subr.bf16.mxu0 %v708_v22 }
  0x65   :  { %504 = vmatpush3.bf16.msra.mxu1 %v570_v18  ;;  %533 = vmatpush3.bf16.msra.mxu0 %v578_v27 }
  0x66   :  { %505 = vmatprep.subr.bf16.mxu1 %v571_v19  ;;  %534 = vmatprep.subr.bf16.mxu0 %v708_v22 }
  0x69   :  { %506 = vmatpush3.bf16.msra.mxu1 %v572_v20  ;;  %535 = vmatpush3.bf16.msra.mxu0 %v579_v45 }
  0x6a   :  { %536 = vmatprep.subr.bf16.mxu0 %v708_v22 }
  0x6d   :  { %537 = vmatpush3.bf16.msra.mxu0 %v580_v46 }
 0x122   :  { %v145_v35 = vpop.f32.mrb[0].mxu0 }
 0x123   :  { %v146_v36 = vadd.f32 %v145_v35, %v90_v33  ;;  %v147_v37 = vpop.f32.mrb[1].mxu0 }
 0x124   :  { %v148_v38 = vadd.f32 %v147_v37, %v94_v34  ;;  %v149_v39 = vpop.f32.mrb[2].mxu0 }
 0x125   :  { %v152_v40 = vmax.f32 %v146_v36, 0.0  ;;  %v150_v41 = vpop.f32.mrb[3].mxu0 }
 0x126   :  { %v153_v42 = vmax.f32 %v148_v38, 0.0 }
 0x127   :  { %v154_v44 = vpack.c.bf16 %v152_v40, %v152_v40 }
 0x128   :  { %v155_v43 = vpack.c.bf16 %v153_v42, %v153_v42 }
 0x12a   :  { %323 = vmatprep.mubr.bf16.mxu1 %v155_v43 }
 0x12b   :  { %324 = vmatmul.mubr.bf16.vlgmr.msra.gmra.mrb[0].mxu1 %v154_v44 }
 0x1fe   :  { %v507_v47 = vpop.f32.mrb[0].mxu1 }
 0x1ff   :  { %v508_v49 = vpop.f32.mrb[1].mxu1 }
 0x200   :  { %v509_v50 = vadd.f32 %v508_v49, %v507_v47  ;;  %v510_v51 = vpop.f32.mrb[2].mxu1 }
 0x201   :  { %v511_v52 = vpop.f32.mrb[3].mxu1 }
 0x202   :  { %v326_v53 = vadd.f32 %v509_v50, %v465_v48 }
 0x204   :  { %v331_v54 = vmax.f32 %v326_v53, 0.0 }
 0x206   :  { %v332_v55 = vpack.c.bf16 %v331_v54, %v331_v54 }
 0x208   :  { %539 = vmatmul.mubr.bf16.vlgmr.msra.gmra.mrb[4].mxu0 %v332_v55 }
 0x2db   :  { %v438_v57 = vpop.f32.mrb[4].mxu0 }
 0x2dc   :  { %v439_v58 = vadd.f32 %v482_v56, %v438_v57  ;;  %v540_v59 = vpop.f32.mrb[5].mxu0 }
 0x2dd   :  { %v441_v60 = vpop.f32.mrb[6].mxu0 }
 0x2de   :  { %444 = vst [vmem:[#allocation10] sm:$0xff] %v439_v58  ;;  %v541_v61 = vpop.f32.mrb[7].mxu0 }
 0x2df   :  { %680 = shalt.err (!%p677_p8)
}
 0x2e0   :  { %s681_s6 = scalar_lea.hbm %s827_s7, 128 }
 0x2e1   :  { %p682_p9 = scmp.ne.s32.totalorder %s827_s7, %s681_s6  ;;  %p685_p10 = scmp.lt.u32.totalorder %s681_s6, %s827_s7 }
 0x2e3   :  { %p687_p11 = pnand %p685_p10, %p682_p9 }
 0x2e5   :  { %690 = shalt.err (!%p687_p11)
}
 0x2e6   :  { %454 = dma.vmem_to_hbm [thread:$0]  %s452_s8, 128, %s827_s7, [#allocation4]  }
 0x2e7   :  { %697 = dma.done.wait [#allocation4], 128  }
 0x2e8   :  { %698 = vsyncadd [#allocation4], 4294967168 }
 0x2e9   :  { %458 = vsyncpa [#allocation3], 1 }
 0x2ea   :  { %459 = vsyncpa [#allocation6], 1 }
 0x2eb   :  { %460 = vsyncpa [#allocation9], 1 }
 0x2ec   :  { %461 = vsyncpa [#allocation4], 1 }

</bundles_post_ra>
